<compile_context>
chip_gen: v7x
topology: tpu7x:2x2x1
jax: 0.10.0
libtpu: 0.0.40
codegen_flags: <defaults>
</compile_context>

<pallas_src>
import jax
import jax.numpy as jnp
from jax.experimental import pallas as pl
from jax.experimental.pallas import tpu as pltpu

OTHER = 0.5                       # the `other` constant added after the linear layer
_SCOPED_VMEM_SAFE = 12 * 1024 * 1024   # conservative default scoped-VMEM budget (v5e)


def _linear_add_relu_kernel(x_ref, wt_ref, b_ref, o_ref):
    # x_ref:  (TM, K)   VMEM  f32   (activations)
    # wt_ref: (K, TN)   VMEM  bf16  (weight, pre-transposed at init: in x out)
    # b_ref:  (1, TN)   VMEM  f32   (bias with +OTHER folded in)
    # o_ref:  (TM, TN)  VMEM  f32
    x_bf = x_ref[...].astype(jnp.bfloat16)          # in-kernel cast: hidden under DMA
    y = jnp.dot(x_bf, wt_ref[...], preferred_element_type=jnp.float32)  # f32 accum
    y = y + b_ref[...]                               # bias (includes +OTHER)
    o_ref[...] = jnp.maximum(y, 0.0).astype(o_ref.dtype)


def _round_up(x, m):
    return ((x + m - 1) // m) * m


def _pick_tile_m(M):
    # Largest row tile that still leaves >= 2 grid steps (both v7x TCs get work,
    # pipeline stays primed). Ragged M handled by cdiv grid + masked last tile.
    for tm in (512, 256, 128):
        if M >= 2 * tm:
            return tm
    return min(128, _round_up(M, 8))


def _pick_tile_n(N, K, w_itemsize):
    # Keep the resident weight tile (K x TN) comfortably inside scoped VMEM.
    if 2 * K * N * w_itemsize <= _SCOPED_VMEM_SAFE // 2:
        return N
    for tn in (1024, 512, 256, 128):
        if N % tn == 0 and 2 * K * tn * w_itemsize <= _SCOPED_VMEM_SAFE // 2:
            return tn
    return 128 if N % 128 == 0 else N
    # TODO(synk): for very large K the contraction dim should also be tiled with an
    # accumulator grid axis; not needed at these layer sizes.


@jax.jit
def linear_add_relu(x, wt_bf16, b_fused):
    """x: [M, K] f32, wt_bf16: [K, N] bf16 (pre-transposed), b_fused: [1, N] f32."""
    M, K = x.shape
    K2, N = wt_bf16.shape
    assert K == K2, "weight/input contraction mismatch"

    tm = _pick_tile_m(M)
    tn = _pick_tile_n(N, K, wt_bf16.dtype.itemsize)
    grid = (pl.cdiv(M, tm), pl.cdiv(N, tn))

    cost = pl.CostEstimate(
        flops=2 * M * K * N,
        transcendentals=0,
        bytes_accessed=(M * K * 4          # x   (f32)
                        + K * N * 2        # W   (bf16)
                        + N * 4            # bias (f32)
                        + M * N * 4),      # out (f32)
    )

    # Rough VMEM footprint (count the constant operands double-buffered to be safe).
    vmem_need = (2 * tm * K * x.dtype.itemsize       # x tile
                 + 2 * tm * tn * 4                   # out tile
                 + 2 * K * tn * wt_bf16.dtype.itemsize  # weight tile
                 + 2 * tn * 4)                       # bias tile
    cp_kwargs = dict(dimension_semantics=("parallel", "parallel"))
    if vmem_need > _SCOPED_VMEM_SAFE:
        # Raise the scoped VMEM limit only when actually needed; cap below v7x's
        # 64 MiB physical VMEM so the same code compiles on every generation.
        cp_kwargs["vmem_limit_bytes"] = min(int(vmem_need * 1.25), 60 * 1024 * 1024)

    return pl.pallas_call(
        _linear_add_relu_kernel,
        out_shape=jax.ShapeDtypeStruct((M, N), x.dtype),
        grid=grid,
        in_specs=[
            pl.BlockSpec((tm, K), lambda i, j: (i, 0)),   # row tile of x
            pl.BlockSpec((K, tn), lambda i, j: (0, j)),   # weight column tile (bf16)
            pl.BlockSpec((1, tn), lambda i, j: (0, j)),   # fused bias tile
        ],
        out_specs=pl.BlockSpec((tm, tn), lambda i, j: (i, j)),
        compiler_params=pltpu.CompilerParams(**cp_kwargs),
        cost_estimate=cost,
    )(x, wt_bf16, b_fused)


if __name__ == "__main__":
    key = jax.random.PRNGKey(0)
    kx, kw, kb = jax.random.split(key, 3)

    # Tile-aligned, lane-dense problem sizes (the original script left size_1 /
    # size_2 / `other` undefined). BATCH=256 -> grid_m=2 so both v7x TCs get work.
    BATCH = 256      # M
    SIZE_1 = 256     # K (in_features), multiple of 8
    SIZE_2 = 256     # N (out_features), multiple of 128 -> unmasked lane-dense stores

    # Synthetic deterministic parameters (torch Linear stores W as [out, in]).
    x = jax.random.normal(kx, (BATCH, SIZE_1), dtype=jnp.float32)
    w = jax.random.normal(kw, (SIZE_2, SIZE_1), dtype=jnp.float32) * 0.05
    b = jax.random.normal(kb, (SIZE_2,), dtype=jnp.float32) * 0.1

    # --- one-time parameter prep at "init" (not per forward call) ---
    wt_bf16 = jnp.asarray(w.T, dtype=jnp.bfloat16)   # [K, N] bf16, pre-transposed
    b_fused = (b + OTHER).reshape(1, -1)             # fold the +OTHER constant (f32)

    out = jax.block_until_ready(linear_add_relu(x, wt_bf16, b_fused))

    # Reference with matching bf16-input / f32-accumulate matmul semantics.
    ref = jnp.maximum(
        jnp.dot(x.astype(jnp.bfloat16), wt_bf16,
                preferred_element_type=jnp.float32) + b_fused,
        0.0,
    )
    assert out.shape == (BATCH, SIZE_2)
    assert jnp.allclose(out, ref, atol=1e-2, rtol=1e-2), "mismatch vs reference"

    # Sanity vs. full-f32 math (bf16 weights/activations introduce ~1% error here).
    ref_f32 = jnp.maximum(x @ w.T + b_fused, 0.0)
    assert jnp.allclose(out, ref_f32, atol=5e-2, rtol=5e-2), "drift vs f32 reference"

    print("KERNEL_OK")
</pallas_src>

<mosaic_0001>
module attributes {stable_mosaic.version = 11 : i64} {
  func.func @_linear_add_relu_kernel(%arg0: i32, %arg1: i32, %arg2: memref<128x256xf32, #tpu.memory_space<vmem>>, %arg3: memref<256x256xbf16, #tpu.memory_space<vmem>>, %arg4: memref<1x256xf32, #tpu.memory_space<vmem>>, %arg5: memref<128x256xf32, #tpu.memory_space<vmem>>) attributes {dimension_semantics = [#tpu.dimension_semantics<parallel>, #tpu.dimension_semantics<parallel>], iteration_bounds = array<i64: 2, 1>, scalar_prefetch = 0 : i64, scratch_operands = 0 : i64, tpu.core_type = #tpu.core_type<tc>, window_params = [{transform_indices = @transform_0, window_bounds = array<i64: 128, 256>}, {transform_indices = @transform_1, window_bounds = array<i64: 256, 256>}, {transform_indices = @transform_2, window_bounds = array<i64: 1, 256>}, {transform_indices = @transform_3, window_bounds = array<i64: 128, 256>}]} {
    %c0 = arith.constant 0 : index
    %c0_0 = arith.constant 0 : index
    %0 = vector.load %arg2[%c0, %c0_0] : memref<128x256xf32, #tpu.memory_space<vmem>>, vector<128x256xf32>
    %1 = arith.truncf %0 : vector<128x256xf32> to vector<128x256xbf16>
    %c0_1 = arith.constant 0 : index
    %c0_2 = arith.constant 0 : index
    %2 = vector.load %arg3[%c0_1, %c0_2] : memref<256x256xbf16, #tpu.memory_space<vmem>>, vector<256x256xbf16>
    %cst = arith.constant dense<0.000000e+00> : vector<128x256xf32>
    %3 = tpu.matmul %1, %2, %cst {dimension_numbers = #tpu.dot_dimension_numbers<[1], [0], [0], [1], [0, 0, 1, 1], [], []>} : vector<128x256xbf16>, vector<256x256xbf16>, vector<128x256xf32> -> vector<128x256xf32>
    %c0_3 = arith.constant 0 : index
    %c0_4 = arith.constant 0 : index
    %4 = vector.load %arg4[%c0_3, %c0_4] : memref<1x256xf32, #tpu.memory_space<vmem>>, vector<1x256xf32>
    %5 = vector.broadcast %4 : vector<1x256xf32> to vector<128x256xf32>
    %6 = arith.addf %3, %5 : vector<128x256xf32>
    %cst_5 = arith.constant 0.000000e+00 : f32
    %7 = vector.broadcast %cst_5 : f32 to vector<128x256xf32>
    %8 = arith.maximumf %6, %7 : vector<128x256xf32>
    %c0_6 = arith.constant 0 : index
    %c0_7 = arith.constant 0 : index
    %9 = vector.load %arg5[%c0_6, %c0_7] : memref<128x256xf32, #tpu.memory_space<vmem>>, vector<128x256xf32>
    tpu.vector_store %arg5[%c0_6, %c0_7], %8 {strides = array<i32>} : memref<128x256xf32, #tpu.memory_space<vmem>>, vector<128x256xf32>,
    return
  }
  func.func @transform_0(%arg0: i32, %arg1: i32) -> (i32, i32) {
    %c0_i32 = arith.constant 0 : i32
    %c0_i32_0 = arith.constant 0 : i32
    return %arg0, %c0_i32 : i32, i32
  }
  func.func @transform_1(%arg0: i32, %arg1: i32) -> (i32, i32) {
    %c0_i32 = arith.constant 0 : i32
    %c0_i32_0 = arith.constant 0 : i32
    return %c0_i32, %arg1 : i32, i32
  }
  func.func @transform_2(%arg0: i32, %arg1: i32) -> (i32, i32) {
    %c0_i32 = arith.constant 0 : i32
    %c0_i32_0 = arith.constant 0 : i32
    return %c0_i32, %arg1 : i32, i32
  }
  func.func @transform_3(%arg0: i32, %arg1: i32) -> (i32, i32) {
    %c0_i32 = arith.constant 0 : i32
    return %arg0, %arg1 : i32, i32
  }
}

</mosaic_0001>

<bundles_post_ra>
// kernel: linear_add_relu.1
= control target key start
LH: loop header
LB: loop body
LE: loop exit
PB: predicated region body
PF: predicated region fallthrough
CT: control target
= control target key end

     0   :  { %8 = vsyncpa [#allocation3], 0  ;;  %s1525_s0 = inlined_call_operand.hbm [shape: f32[256,256], index: 0, kind: input, shape index: {}]   ;;  %s1526_s1 = inlined_call_operand.hbm [shape: bf16[256,256], index: 1, kind: input, shape index: {}]   ;;  %s1527_s2 = inlined_call_operand.vmem [shape: f32[1,256], index: 2, kind: input, shape index: {}]   ;;  %s1528_s3 = inlined_call_operand.hbm [shape: f32[256,256], index: 3, kind: output, shape index: {}]  }
   0x1   :  { %10 = vsyncpa [#allocation3 + $0x1], 0 }
   0x2   :  { %11 = vsyncpa [#allocation6], 0 }
   0x3   :  { %12 = vsyncpa [#allocation4], 0 }
   0x4   :  { %14 = vsyncpa [#allocation4 + $0x1], 0  ;;  %s1194_s12 = smov 0   ;;  %s1196_s13 = smov 0  }
   0x5   :  { %s1198_s14 = smov 0   ;;  %s1200_s15 = smov 0  }
   0x6   :  { %s1202_s16 = smov 0   ;;  %s1204_s17 = smov 0  }
   0x7 LB: > { %s804_s18 = sadd.s32 4294967295, %s1163_s17   ;;  %s805_s19 = sadd.s32 4294967294, %s1163_s17   ;;  %s1163_s17 = sphi %s1204_s17, %s20_s17   ;;  %s1159_s16 = sphi %s1202_s16, %s1552_s16   ;;  %s1155_s15 = sphi %s1200_s15, %s1551_s15   ;;  %s1151_s14 = sphi %s1198_s14, %s1550_s14   ;;  %s1147_s13 = sphi %s1196_s13, %s1549_s13   ;;  %s1143_s12 = sphi %s1194_s12, %s1548_s12  }
   0x8   : > { %p52_p0 = scmp.ne.s32.totalorder %s1147_s13, %s1143_s12  ;;  %p1228_p1 = scmp.eq.s32.totalorder %s804_s18, 0 }
   0x9   : > { %p1232_p2 = scmp.eq.s32.totalorder %s804_s18, 1  ;;  %p136_p3 = scmp.eq.s32.totalorder %s805_s19, 1 }
   0xa   : > { %s1533_s20 = scalar_select %p1228_p1, 1, 0 }
   0xb   : > { %s1534_s21 = scalar_select %p1232_p2, 1, 0 }
   0xc   : > { %p1238_p4 = por %p1228_p1, %p52_p0  ;;  %p806_p5 = scmp.ge.s32.totalorder %s1163_s17, 1 }
   0xd   : > { %p1243_p6 = por %p136_p3, %p52_p0  ;;  %p143_p7 = scmp.lt.s32.totalorder %s1163_s17, 3 }
   0xe   : > { %s1535_s22 = scalar_select %p1238_p4, 1, 0 }
   0xf   : > { %s1536_s23 = scalar_select %p1243_p6, 1, 0 }
  0x10   : > { %p1248_p8 = pnand %p806_p5, %p143_p7  ;;  %s1165_s25 = smov [#allocation5]  }
  0x11   : > { %s158_s26 = sshll.u32 %s1165_s25, 4  ;;  %s32_s28 = sadd.s32 1, %s1159_s16  ;;  %s159_s26 = int_to_ptr.vmem [resolvable:$true] %s158_s26 }
  0x12   : > { %s1537_s24 = scalar_select %p1248_p8, 1, 0 }
  0x13   : > { %p900_p9 = pneg %p1248_p8  ;;  %s1019_s4 = scalar_lea.hbm %s1526_s1, 4096 }
  0x14   : > { %p1020_p12 = scmp.ne.s32.totalorder %s1526_s1, %s1019_s4  ;;  %p1026_p5 = scmp.lt.u32.totalorder %s1019_s4, %s1526_s1 }
  0x15   : > { %p1257_p11 = pnand %p900_p9, %p1228_p1 }
  0x17   : > { %p1021_p13 = pneg %p1257_p11 }
  0x19   : > { %p1022_p0 = pnand %p1021_p13, %p1020_p12 }
  0x1b   : > { %p1023_p3 = pneg %p1022_p0 }
  0x1d   : > { %p1028_p7 = pnand %p1026_p5, %p1023_p3 }
  0x1f   : > { %1031 = shalt.err (!%p1028_p7)
}
  0x20   : > { %s1032_s9 = scalar_lea.vmem %s159_s26, 4096  ;;  %p1040_p1 = scmp.lt.s32.totalorder %s159_s26, %s159_s26 }
  0x21   : > { %p1033_p9 = scmp.ne.s32.totalorder %s159_s26, %s1032_s9  ;;  %p1041_p4 = scmp.lt.s32.totalorder %s1032_s9, %s1032_s9 }
  0x23   : > { %p1035_p10 = pnand %p1033_p9, %p1021_p13  ;;  %p1042_p8 = por %p1041_p4, %p1040_p1 }
  0x25   : > { %p1036_p6 = pneg %p1035_p10 }
  0x27   : > { %p1043_p2 = pnand %p1042_p8, %p1036_p6 }
  0x29   : > { %1046 = shalt.err (!%p1043_p2)
}
  0x2a   : > { %s1166_s10 = smov 128   ;;  %s1167_s11 = smov 8  }
  0x2b   : > { %903 = dma.hbm_to_vmem [thread:$0]  (!%p1257_p11), %s1526_s1, 4096, %s159_s26, [#allocation6], %s1166_s10, %s1166_s10, %s1167_s11  }
  0x2c   : > { %p34_p1 = scmp.ge.s32.totalorder %s32_s28, 2  ;;  %s39_s25 = sadd.s32 1, %s1151_s14 }
  0x2d   : > { %p46_p2 = scmp.ne.s32.totalorder %s1151_s14, %s1147_s13  ;;  %p47_p4 = scmp.eq.s32.totalorder %s1163_s17, 0 }
  0x2e   : > { %s1554_s28 = smov (%p34_p1, %s32_s28), 0  ;;  %p1540_p8 = scmp.ne.s32.totalorder %s1534_s21, 0 }
  0x2f   : > { %p1284_p6 = por %p47_p4, %p46_p2  ;;  %s36_s27 = ssub.s32 %s1159_s16, %s1554_s28 }
  0x30   : > { %p1290_p10 = por %p1540_p8, %p46_p2  ;;  %p913_p12 = scmp.lt.s32.totalorder %s1163_s17, 2 }
  0x31   : > { %p37_p11 = scmp.eq.s32.totalorder %s36_s27, 0  ;;  %s180_s26 = sand.u32 1, %s1151_s14  }
  0x32   : > { %s810_s4 = sshll.u32 %s180_s26, 8  ;;  %s857_s6 = sshll.u32 %s1159_s16, 12 }
  0x33   : > { %s1299_s5 = scalar_select %p37_p11, %s1151_s14, %s39_s25  }
  0x34   : > { %s1305_s9 = scalar_lea.hbm %s1525_s0, %s857_s6  ;;  %s184_s21 = scalar_lea.vmem [#allocation2], %s810_s4 }
  0x35   : > { %s192_s10 = sshll.u32 %s184_s21, 4  ;;  %p1311_p13 = pnand %p913_p12, %p1284_p6  ;;  %s1307_s10 = int_to_ptr.vmem [resolvable:$true] %s192_s10 }
  0x36   : > { %s1315_s18 = scalar_lea.sflag [#allocation3], %s180_s26  ;;  %s1047_s19 = scalar_lea.hbm %s1305_s9, 4096 }
  0x37   : > { %p1048_p0 = scmp.ne.s32.totalorder %s1305_s9, %s1047_s19  ;;  %p1049_p3 = pneg %p1311_p13 }
  0x38   : > { %s1052_s29 = scalar_lea.hbm %s1525_s0, 8192  ;;  %p1053_p9 = scmp.lt.u32.totalorder %s1305_s9, %s1525_s0 }
  0x39   : > { %p1050_p5 = pnand %p1049_p3, %p1048_p0  ;;  %p1054_p1 = scmp.lt.u32.totalorder %s1052_s29, %s1047_s19 }
  0x3a   : > { %p1056_p4 = scmp.lt.u32.totalorder %s1047_s19, %s1305_s9 }
  0x3b   : > { %p1051_p7 = pneg %p1050_p5  ;;  %p1055_p2 = por %p1054_p1, %p1053_p9 }
  0x3d   : > { %p1057_p6 = por %p1056_p4, %p1055_p2 }
  0x3f   : > { %p1058_p8 = pnand %p1057_p6, %p1051_p7 }
  0x41   : > { %1061 = shalt.err (!%p1058_p8)
}
  0x42   : > { %s1062_s26 = scalar_lea.vmem %s1307_s10, 4096  ;;  %s1168_s7 = smov [#allocation2]  }
  0x43   : > { %p1063_p12 = scmp.ne.s32.totalorder %s1307_s10, %s1062_s26  ;;  %s1067_s8 = sshll.u32 %s1168_s7, 4  ;;  %s1068_s8 = int_to_ptr.vmem [resolvable:$false] %s1067_s8 }
  0x44   : > { %s1069_s21 = scalar_lea.vmem %s1068_s8, 8192  ;;  %p1070_p5 = scmp.lt.s32.totalorder %s1307_s10, %s1068_s8 }
  0x45   : > { %p1065_p11 = pnand %p1063_p12, %p1049_p3  ;;  %p1071_p9 = scmp.lt.s32.totalorder %s1069_s21, %s1062_s26 }
  0x47   : > { %p1066_p0 = pneg %p1065_p11  ;;  %p1072_p1 = por %p1071_p9, %p1070_p5 }
  0x49   : > { %p1073_p2 = pnand %p1072_p1, %p1066_p0 }
  0x4b   : > { %1076 = shalt.err (!%p1073_p2)
}
  0x4c   : > { %s1169_s19 = smov 256   ;;  %s1170_s25 = smov 16  }
  0x4d   : > { %907 = dma.hbm_to_vmem [thread:$0]  (!%p1311_p13), %s1305_s9, 4096, %s1307_s10, %s1315_s18, %s1169_s19, %s1169_s19, %s1170_s25  }
  0x4e   : > { %p1543_p3 = scmp.ne.s32.totalorder %s1537_s24, 0 }
  0x4f   : > { %s1346_s27 = sand.u32 (!%p1543_p3), 1, %s1147_s13   ;;  %p1544_p7 = scmp.ne.s32.totalorder (!%p1543_p3), %s1535_s22, 0 }
  0x50   : > { %204 = sbr.rel (%p1543_p3) target bundleno = 414 (0x19e), region = 32  ;;  %s815_s29 = sshll.u32 (!%p1543_p3), %s1346_s27, 8 }
  0x51   : > { %s207_s4 = scalar_lea.sflag (!%p1543_p3), [#allocation3], %s1346_s27  ;;  %s1352_s6 = scalar_lea.vmem (!%p1543_p3), [#allocation2], %s815_s29 }
  0x57   : > { %1130 = dma.done.wait (%p1544_p7), %s207_s4, 4096  }
  0x58   : > { %1132 = vsyncadd (%p1544_p7), %s207_s4, 4294963200  ;;  %p1545_p13 = scmp.ne.s32.totalorder %s1533_s20, 0 }
  0x5a   : > { %1134 = dma.done.wait (%p1545_p13), [#allocation6], 4096  }
  0x5b   : > { %1136 = vsyncadd (%p1545_p13), [#allocation6], 4294963200  ;;  %v971_v0 = vld [vmem:[#allocation5 + $0x4] ss:$8 sps:$4 sm:$0xff]   ;;  %v973_v1 = vld [vmem:[#allocation5] ss:$8 sps:$4 sm:$0xff]  }
  0x5c   : > { %502 = vmatprep.subr.bf16.mxu0 %v971_v0  ;;  %860 = vmatprep.subr.bf16.mxu1 %v971_v0  ;;  %v974_v2 = vld [vmem:[#allocation5 + $0x14] ss:$8 sps:$4 sm:$0xff]   ;;  %v976_v3 = vld [vmem:[#allocation5 + $0x10] ss:$8 sps:$4 sm:$0xff]   ;;  %v977_v4 = vld [vmem:[#allocation5 + $0x24] ss:$8 sps:$4 sm:$0xff]  }
  0x5d   : > { %503 = vmatpush1.bf16.msra.mxu0 %v973_v1  ;;  %876 = vmatpush1.bf16.msra.mxu1 %v973_v1  ;;  %v979_v5 = vld [vmem:[#allocation5 + $0x20] ss:$8 sps:$4 sm:$0xff]   ;;  %v980_v6 = vld [vmem:[#allocation5 + $0x34] ss:$8 sps:$4 sm:$0xff]   ;;  %v982_v7 = vld [vmem:[#allocation5 + $0x30] ss:$8 sps:$4 sm:$0xff]  }
  0x5e   : > { %504 = vmatprep.subr.bf16.mxu0 %v974_v2  ;;  %861 = vmatprep.subr.bf16.mxu1 %v974_v2  ;;  %v983_v8 = vld [vmem:[#allocation5 + $0x44] ss:$8 sps:$4 sm:$0xff]   ;;  %v985_v9 = vld [vmem:[#allocation5 + $0x40] ss:$8 sps:$4 sm:$0xff]   ;;  %v986_v10 = vld [vmem:[#allocation5 + $0x54] ss:$8 sps:$4 sm:$0xff]  }
  0x5f   : > { %v988_v11 = vld [vmem:[#allocation5 + $0x50] ss:$8 sps:$4 sm:$0xff]   ;;  %v989_v12 = vld [vmem:[#allocation5 + $0x64] ss:$8 sps:$4 sm:$0xff]   ;;  %v991_v18 = vld [vmem:[#allocation5 + $0x60] ss:$8 sps:$4 sm:$0xff]  }
  0x60   : > { %v251_v13 = vld [vmem:[%s1352_s6 + $0x8] sm:$0xff]  ;;  %v253_v14 = vld [vmem:[%s1352_s6 + $0x18] sm:$0xff]  ;;  %v250_v38 = vld [vmem:[%s1352_s6] sm:$0xff]  ;;  %s1411_s24 = scalar_lea.vmem [#allocation7], %s815_s29  ;;  %s859_s9 = sshll.u32 %s1155_s15, 12 }
  0x61   : > { %505 = vmatpush1.bf16.msra.mxu0 %v976_v3  ;;  %877 = vmatpush1.bf16.msra.mxu1 %v976_v3  ;;  %v283_v15 = vpack.c.bf16 %v253_v14, %v251_v13  ;;  %v267_v16 = vld [vmem:[%s1352_s6 + $0x88] sm:$0xff]  ;;  %v269_v17 = vld [vmem:[%s1352_s6 + $0x98] sm:$0xff]  ;;  %v252_v39 = vld [vmem:[%s1352_s6 + $0x10] sm:$0xff]  ;;  %s696_s10 = sshll.u32 %s1411_s24, 4  ;;  %s1468_s18 = scalar_lea.hbm %s1528_s3, %s859_s9  ;;  %s1470_s10 = int_to_ptr.vmem [resolvable:$true] %s696_s10 }
  0x62   : > { %506 = vmatprep.subr.bf16.mxu0 %v977_v4  ;;  %862 = vmatprep.subr.bf16.mxu1 %v977_v4  ;;  %v291_v19 = vpack.c.bf16 %v269_v17, %v267_v16  ;;  %v992_v20 = vld [vmem:[#allocation5 + $0x74] ss:$8 sps:$4 sm:$0xff]   ;;  %v994_v21 = vld [vmem:[#allocation5 + $0x70] ss:$8 sps:$4 sm:$0xff]   ;;  %v995_v22 = vld [vmem:[#allocation5 + $0x84] ss:$8 sps:$4 sm:$0xff]   ;;  %v282_v46 = vpack.c.bf16 %v252_v39, %v250_v38  ;;  %v332_v16 = vlaneseq }
  0x63   : > { %534 = vmatprep.mubr.bf16.mxu0 %v283_v15  ;;  %v997_v23 = vld [vmem:[#allocation5 + $0x80] ss:$8 sps:$4 sm:$0xff]   ;;  %v998_v24 = vld [vmem:[#allocation5 + $0x94] ss:$8 sps:$4 sm:$0xff]   ;;  %v1000_v25 = vld [vmem:[#allocation5 + $0x90] ss:$8 sps:$4 sm:$0xff]  }
  0x64   : > { %574 = vmatprep.mubr.bf16.mxu1 %v291_v19  ;;  %v1001_v26 = vld [vmem:[#allocation5 + $0xa4] ss:$8 sps:$4 sm:$0xff]   ;;  %v1003_v27 = vld [vmem:[#allocation5 + $0xa0] ss:$8 sps:$4 sm:$0xff]   ;;  %v1004_v28 = vld [vmem:[#allocation5 + $0xb4] ss:$8 sps:$4 sm:$0xff]  }
  0x65   : > { %507 = vmatpush1.bf16.msra.mxu0 %v979_v5  ;;  %878 = vmatpush1.bf16.msra.mxu1 %v979_v5  ;;  %v1006_v29 = vld [vmem:[#allocation5 + $0xb0] ss:$8 sps:$4 sm:$0xff]   ;;  %v1007_v30 = vld [vmem:[#allocation5 + $0xc4] ss:$8 sps:$4 sm:$0xff]   ;;  %v1009_v31 = vld [vmem:[#allocation5 + $0xc0] ss:$8 sps:$4 sm:$0xff]  }
  0x66   : > { %508 = vmatprep.subr.bf16.mxu0 %v980_v6  ;;  %863 = vmatprep.subr.bf16.mxu1 %v980_v6  ;;  %v1010_v32 = vld [vmem:[#allocation5 + $0xd4] ss:$8 sps:$4 sm:$0xff]   ;;  %v1012_v33 = vld [vmem:[#allocation5 + $0xd0] ss:$8 sps:$4 sm:$0xff]   ;;  %v1013_v34 = vld [vmem:[#allocation5 + $0xe4] ss:$8 sps:$4 sm:$0xff]  }
  0x67   : > { %v1015_v35 = vld [vmem:[#allocation5 + $0xe0] ss:$8 sps:$4 sm:$0xff]   ;;  %v1016_v36 = vld [vmem:[#allocation5 + $0xf4] ss:$8 sps:$4 sm:$0xff]   ;;  %v1018_v37 = vld [vmem:[#allocation5 + $0xf0] ss:$8 sps:$4 sm:$0xff]  }
  0x68   : > { %v266_v40 = vld [vmem:[%s1352_s6 + $0x80] sm:$0xff]  ;;  %v268_v41 = vld [vmem:[%s1352_s6 + $0x90] sm:$0xff]  ;;  %v255_v42 = vld [vmem:[%s1352_s6 + $0x28] sm:$0xff]  ;;  %v333_v17 = vshrl.u32 %v332_v16, 7  ;;  %s680_s26 = scalar_lea.sflag [#allocation4], %s1346_s27  ;;  %s1077_s7 = scalar_lea.vmem %s1470_s10, 4096 }
  0x69   : > { %509 = vmatpush1.bf16.msra.mxu0 %v982_v7  ;;  %879 = vmatpush1.bf16.msra.mxu1 %v982_v7  ;;  %v257_v43 = vld [vmem:[%s1352_s6 + $0x38] sm:$0xff]  ;;  %v271_v44 = vld [vmem:[%s1352_s6 + $0xa8] sm:$0xff]  ;;  %v290_v47 = vpack.c.bf16 %v268_v41, %v266_v40  ;;  %v254_v50 = vld [vmem:[%s1352_s6 + $0x20] sm:$0xff]  ;;  %p1078_p4 = scmp.ne.s32.totalorder %s1470_s10, %s1077_s7  ;;  %s1171_s8 = smov [#allocation7]  }
  0x6a   : > { %510 = vmatprep.subr.bf16.mxu0 %v983_v8  ;;  %864 = vmatprep.subr.bf16.mxu1 %v983_v8  ;;  %v273_v45 = vld [vmem:[%s1352_s6 + $0xb8] sm:$0xff]  ;;  %v285_v48 = vpack.c.bf16 %v257_v43, %v255_v42  ;;  %v256_v51 = vld [vmem:[%s1352_s6 + $0x30] sm:$0xff]  ;;  %v270_v52 = vld [vmem:[%s1352_s6 + $0xa0] sm:$0xff]  ;;  %s1081_s21 = sshll.u32 %s1171_s8, 4  ;;  %s1082_s21 = int_to_ptr.vmem [resolvable:$false] %s1081_s21 }
  0x6b   : > { %v293_v49 = vpack.c.bf16 %v273_v45, %v271_v44  ;;  %v272_v53 = vld [vmem:[%s1352_s6 + $0xb0] sm:$0xff]  ;;  %v259_v54 = vld [vmem:[%s1352_s6 + $0x48] sm:$0xff]  ;;  %v261_v55 = vld [vmem:[%s1352_s6 + $0x58] sm:$0xff]  ;;  %v284_v58 = vpack.c.bf16 %v256_v51, %v254_v50  ;;  %p1079_p6 = pnand %p1078_p4, %p1290_p10  ;;  %s1083_s19 = scalar_lea.vmem %s1082_s21, 8192 }
  0x6c   : > { %v275_v56 = vld [vmem:[%s1352_s6 + $0xc8] sm:$0xff]  ;;  %v277_v57 = vld [vmem:[%s1352_s6 + $0xd8] sm:$0xff]  ;;  %v292_v59 = vpack.c.bf16 %v272_v53, %v270_v52  ;;  %v287_v60 = vpack.c.bf16 %v261_v55, %v259_v54  ;;  %v258_v62 = vld [vmem:[%s1352_s6 + $0x40] sm:$0xff]  ;;  %p1084_p12 = scmp.lt.s32.totalorder %s1470_s10, %s1082_s21  ;;  %p1085_p11 = scmp.lt.s32.totalorder %s1083_s19, %s1077_s7 }
  0x6d   : > { %511 = vmatpush1.bf16.msra.mxu0 %v985_v9  ;;  %880 = vmatpush1.bf16.msra.mxu1 %v985_v9  ;;  %v295_v61 = vpack.c.bf16 %v277_v57, %v275_v56  ;;  %v260_v63 = vld [vmem:[%s1352_s6 + $0x50] sm:$0xff]  ;;  %v274_v0 = vld [vmem:[%s1352_s6 + $0xc0] sm:$0xff]  ;;  %v263_v2 = vld [vmem:[%s1352_s6 + $0x68] sm:$0xff]  ;;  %p1080_p8 = pneg %p1079_p6 }
  0x6e   : > { %512 = vmatprep.subr.bf16.mxu0 %v986_v10  ;;  %865 = vmatprep.subr.bf16.mxu1 %v986_v10  ;;  %v276_v1 = vld [vmem:[%s1352_s6 + $0xd0] sm:$0xff]  ;;  %v265_v3 = vld [vmem:[%s1352_s6 + $0x78] sm:$0xff]  ;;  %v279_v4 = vld [vmem:[%s1352_s6 + $0xe8] sm:$0xff]  ;;  %v286_v6 = vpack.c.bf16 %v260_v63, %v258_v62  ;;  %p1086_p0 = por %p1085_p11, %p1084_p12 }
  0x6f   : > { %v281_v5 = vld [vmem:[%s1352_s6 + $0xf8] sm:$0xff]  ;;  %v294_v7 = vpack.c.bf16 %v276_v1, %v274_v0  ;;  %v289_v8 = vpack.c.bf16 %v265_v3, %v263_v2  ;;  %v262_v10 = vld [vmem:[%s1352_s6 + $0x60] sm:$0xff]  ;;  %v280_v13 = vld [vmem:[%s1352_s6 + $0xf0] sm:$0xff] }
  0x70   : > { %v297_v9 = vpack.c.bf16 %v281_v5, %v279_v4  ;;  %v330_v19 = vld [vmem:[%s1527_s2] sm:$0x3]  ;;  %p1087_p5 = pnand %p1086_p0, %p1080_p8 }
  0x71   : > { %513 = vmatpush1.bf16.msra.mxu0 %v988_v11  ;;  %881 = vmatpush1.bf16.msra.mxu1 %v988_v11  ;;  %v264_v11 = vld [vmem:[%s1352_s6 + $0x70] sm:$0xff] }
  0x72   : > { %514 = vmatprep.subr.bf16.mxu0 %v989_v12  ;;  %866 = vmatprep.subr.bf16.mxu1 %v989_v12  ;;  %v278_v12 = vld [vmem:[%s1352_s6 + $0xe0] sm:$0xff]  ;;  %v288_v14 = vpack.c.bf16 %v264_v11, %v262_v10 }
  0x73   : > { %v296_v15 = vpack.c.bf16 %v280_v13, %v278_v12 }
  0x75   : > { %515 = vmatpush1.bf16.msra.mxu0 %v991_v18  ;;  %882 = vmatpush1.bf16.msra.mxu1 %v991_v18  ;;  %v334_v18 = vsub.s32 0, %v333_v17 }
  0x76   : > { %516 = vmatprep.subr.bf16.mxu0 %v992_v20  ;;  %867 = vmatprep.subr.bf16.mxu1 %v992_v20  ;;  %v338_v20 = vsub.s32 1, %v333_v17 }
  0x79   : > { %517 = vmatpush1.bf16.msra.mxu0 %v994_v21  ;;  %883 = vmatpush1.bf16.msra.mxu1 %v994_v21  ;;  %v1397_v21 = vrot.slane %v330_v19, %v334_v18 }
  0x7a   : > { %518 = vmatprep.subr.bf16.mxu0 %v995_v22  ;;  %868 = vmatprep.subr.bf16.mxu1 %v995_v22  ;;  %v1399_v22 = vrot.slane %v330_v19, %v338_v20 }
  0x7d   : > { %519 = vmatpush1.bf16.msra.mxu0 %v997_v23  ;;  %884 = vmatpush1.bf16.msra.mxu1 %v997_v23 }
  0x7e   : > { %520 = vmatprep.subr.bf16.mxu0 %v998_v24  ;;  %869 = vmatprep.subr.bf16.mxu1 %v998_v24 }
  0x81   : > { %521 = vmatpush1.bf16.msra.mxu0 %v1000_v25  ;;  %885 = vmatpush1.bf16.msra.mxu1 %v1000_v25 }
  0x82   : > { %522 = vmatprep.subr.bf16.mxu0 %v1001_v26  ;;  %870 = vmatprep.subr.bf16.mxu1 %v1001_v26 }
  0x85   : > { %523 = vmatpush1.bf16.msra.mxu0 %v1003_v27  ;;  %886 = vmatpush1.bf16.msra.mxu1 %v1003_v27 }
  0x86   : > { %524 = vmatprep.subr.bf16.mxu0 %v1004_v28  ;;  %871 = vmatprep.subr.bf16.mxu1 %v1004_v28 }
  0x89   : > { %525 = vmatpush1.bf16.msra.mxu0 %v1006_v29  ;;  %887 = vmatpush1.bf16.msra.mxu1 %v1006_v29 }
  0x8a   : > { %526 = vmatprep.subr.bf16.mxu0 %v1007_v30  ;;  %872 = vmatprep.subr.bf16.mxu1 %v1007_v30 }
  0x8d   : > { %527 = vmatpush1.bf16.msra.mxu0 %v1009_v31  ;;  %888 = vmatpush1.bf16.msra.mxu1 %v1009_v31 }
  0x8e   : > { %528 = vmatprep.subr.bf16.mxu0 %v1010_v32  ;;  %873 = vmatprep.subr.bf16.mxu1 %v1010_v32 }
  0x91   : > { %529 = vmatpush1.bf16.msra.mxu0 %v1012_v33  ;;  %889 = vmatpush1.bf16.msra.mxu1 %v1012_v33 }
  0x92   : > { %530 = vmatprep.subr.bf16.mxu0 %v1013_v34  ;;  %874 = vmatprep.subr.bf16.mxu1 %v1013_v34 }
  0x95   : > { %531 = vmatpush1.bf16.msra.mxu0 %v1015_v35  ;;  %890 = vmatpush1.bf16.msra.mxu1 %v1015_v35 }
  0x96   : > { %532 = vmatprep.subr.bf16.mxu0 %v1016_v36  ;;  %875 = vmatprep.subr.bf16.mxu1 %v1016_v36 }
  0x99   : > { %533 = vmatpush1.bf16.msra.mxu0 %v1018_v37  ;;  %891 = vmatpush1.bf16.msra.mxu1 %v1018_v37 }
  0x9c   : > { %535 = vmatmul.mubr.bf16.vlgmr.msra.gmra.mrb[0].mxu0 %v282_v46  ;;  %575 = vmatmul.mubr.bf16.vlgmr.msra.gmra.mrb[0].mxu1 %v290_v47 }
  0x9d   : > { %544 = vmatprep.mubr.bf16.mxu0 %v285_v48  ;;  %584 = vmatprep.mubr.bf16.mxu1 %v293_v49 }
  0xa4   : > { %545 = vmatmul.mubr.bf16.gmra.mrb[4].mxu0 %v284_v58  ;;  %585 = vmatmul.mubr.bf16.gmra.mrb[4].mxu1 %v292_v59 }
  0xa5   : > { %554 = vmatprep.mubr.bf16.mxu0 %v287_v60  ;;  %594 = vmatprep.mubr.bf16.mxu1 %v295_v61 }
  0xac   : > { %555 = vmatmul.mubr.bf16.gmra.mrb[8].mxu0 %v286_v6  ;;  %595 = vmatmul.mubr.bf16.gmra.mrb[8].mxu1 %v294_v7 }
  0xad   : > { %564 = vmatprep.mubr.bf16.mxu0 %v289_v8  ;;  %604 = vmatprep.mubr.bf16.mxu1 %v297_v9 }
  0xb4   : > { %565 = vmatmul.mubr.bf16.gmra.mrb[12].mxu0 %v288_v14  ;;  %605 = vmatmul.mubr.bf16.gmra.mrb[12].mxu1 %v296_v15 }
 0x16f   : > { %v536_v23 = vpop.f32.mrb[0].mxu0  ;;  %v576_v24 = vpop.f32.mrb[0].mxu1 }
 0x170   : > { %v537_v25 = vadd.f32 %v536_v23, %v1397_v21  ;;  %v577_v26 = vadd.f32 %v576_v24, %v1397_v21  ;;  %v538_v27 = vpop.f32.mrb[1].mxu0  ;;  %v578_v28 = vpop.f32.mrb[1].mxu1 }
 0x171   : > { %v539_v29 = vadd.f32 %v538_v27, %v1399_v22  ;;  %v579_v30 = vadd.f32 %v578_v28, %v1399_v22  ;;  %v540_v31 = vpop.f32.mrb[2].mxu0  ;;  %v580_v32 = vpop.f32.mrb[2].mxu1 }
 0x172   : > { %v615_v33 = vmax.f32 %v537_v25, 0.0  ;;  %v631_v34 = vmax.f32 %v577_v26, 0.0  ;;  %v541_v35 = vadd.f32 %v540_v31, %v1397_v21  ;;  %v581_v36 = vadd.f32 %v580_v32, %v1397_v21  ;;  %v542_v37 = vpop.f32.mrb[3].mxu0  ;;  %v582_v38 = vpop.f32.mrb[3].mxu1 }
 0x173   : > { %v616_v39 = vmax.f32 %v539_v29, 0.0  ;;  %v632_v40 = vmax.f32 %v579_v30, 0.0  ;;  %v543_v41 = vadd.f32 %v542_v37, %v1399_v22  ;;  %v583_v42 = vadd.f32 %v582_v38, %v1399_v22 }
 0x174   : > { %647 = vst [vmem:[%s1411_s24] sm:$0xff] %v615_v33  ;;  %663 = vst [vmem:[%s1411_s24 + $0x80] sm:$0xff] %v631_v34  ;;  %v617_v43 = vmax.f32 %v541_v35, 0.0  ;;  %v633_v44 = vmax.f32 %v581_v36, 0.0 }
 0x175   : > { %648 = vst [vmem:[%s1411_s24 + $0x8] sm:$0xff] %v616_v39  ;;  %664 = vst [vmem:[%s1411_s24 + $0x88] sm:$0xff] %v632_v40  ;;  %v618_v45 = vmax.f32 %v543_v41, 0.0  ;;  %v634_v46 = vmax.f32 %v583_v42, 0.0 }
 0x176   : > { %649 = vst [vmem:[%s1411_s24 + $0x10] sm:$0xff] %v617_v43  ;;  %665 = vst [vmem:[%s1411_s24 + $0x90] sm:$0xff] %v633_v44 }
 0x177   : > { %650 = vst [vmem:[%s1411_s24 + $0x18] sm:$0xff] %v618_v45  ;;  %666 = vst [vmem:[%s1411_s24 + $0x98] sm:$0xff] %v634_v46  ;;  %v546_v47 = vpop.f32.mrb[4].mxu0  ;;  %v586_v48 = vpop.f32.mrb[4].mxu1 }
 0x178   : > { %v547_v49 = vadd.f32 %v546_v47, %v1397_v21  ;;  %v587_v50 = vadd.f32 %v586_v48, %v1397_v21  ;;  %v548_v51 = vpop.f32.mrb[5].mxu0  ;;  %v588_v52 = vpop.f32.mrb[5].mxu1 }
 0x179   : > { %v549_v53 = vadd.f32 %v548_v51, %v1399_v22  ;;  %v589_v54 = vadd.f32 %v588_v52, %v1399_v22  ;;  %v550_v55 = vpop.f32.mrb[6].mxu0  ;;  %v590_v56 = vpop.f32.mrb[6].mxu1 }
 0x17a   : > { %v619_v57 = vmax.f32 %v547_v49, 0.0  ;;  %v635_v58 = vmax.f32 %v587_v50, 0.0  ;;  %v551_v59 = vadd.f32 %v550_v55, %v1397_v21  ;;  %v591_v60 = vadd.f32 %v590_v56, %v1397_v21  ;;  %v552_v61 = vpop.f32.mrb[7].mxu0  ;;  %v592_v62 = vpop.f32.mrb[7].mxu1 }
 0x17b   : > { %v620_v63 = vmax.f32 %v549_v53, 0.0  ;;  %v636_v0 = vmax.f32 %v589_v54, 0.0  ;;  %v553_v1 = vadd.f32 %v552_v61, %v1399_v22  ;;  %v593_v2 = vadd.f32 %v592_v62, %v1399_v22 }
 0x17c   : > { %651 = vst [vmem:[%s1411_s24 + $0x20] sm:$0xff] %v619_v57  ;;  %667 = vst [vmem:[%s1411_s24 + $0xa0] sm:$0xff] %v635_v58  ;;  %v621_v3 = vmax.f32 %v551_v59, 0.0  ;;  %v637_v4 = vmax.f32 %v591_v60, 0.0 }
 0x17d   : > { %652 = vst [vmem:[%s1411_s24 + $0x28] sm:$0xff] %v620_v63  ;;  %668 = vst [vmem:[%s1411_s24 + $0xa8] sm:$0xff] %v636_v0  ;;  %v622_v5 = vmax.f32 %v553_v1, 0.0  ;;  %v638_v6 = vmax.f32 %v593_v2, 0.0 }
 0x17e   : > { %653 = vst [vmem:[%s1411_s24 + $0x30] sm:$0xff] %v621_v3  ;;  %669 = vst [vmem:[%s1411_s24 + $0xb0] sm:$0xff] %v637_v4 }
 0x17f   : > { %654 = vst [vmem:[%s1411_s24 + $0x38] sm:$0xff] %v622_v5  ;;  %670 = vst [vmem:[%s1411_s24 + $0xb8] sm:$0xff] %v638_v6  ;;  %v556_v7 = vpop.f32.mrb[8].mxu0  ;;  %v596_v8 = vpop.f32.mrb[8].mxu1 }
 0x180   : > { %v557_v9 = vadd.f32 %v556_v7, %v1397_v21  ;;  %v597_v10 = vadd.f32 %v596_v8, %v1397_v21  ;;  %v558_v11 = vpop.f32.mrb[9].mxu0  ;;  %v598_v12 = vpop.f32.mrb[9].mxu1 }
 0x181   : > { %v559_v13 = vadd.f32 %v558_v11, %v1399_v22  ;;  %v599_v14 = vadd.f32 %v598_v12, %v1399_v22  ;;  %v560_v15 = vpop.f32.mrb[10].mxu0  ;;  %v600_v16 = vpop.f32.mrb[10].mxu1 }
 0x182   : > { %v623_v17 = vmax.f32 %v557_v9, 0.0  ;;  %v639_v18 = vmax.f32 %v597_v10, 0.0  ;;  %v561_v19 = vadd.f32 %v560_v15, %v1397_v21  ;;  %v601_v20 = vadd.f32 %v600_v16, %v1397_v21  ;;  %v562_v23 = vpop.f32.mrb[11].mxu0  ;;  %v602_v24 = vpop.f32.mrb[11].mxu1 }
 0x183   : > { %v624_v25 = vmax.f32 %v559_v13, 0.0  ;;  %v640_v26 = vmax.f32 %v599_v14, 0.0  ;;  %v563_v27 = vadd.f32 %v562_v23, %v1399_v22  ;;  %v603_v28 = vadd.f32 %v602_v24, %v1399_v22 }
 0x184   : > { %655 = vst [vmem:[%s1411_s24 + $0x40] sm:$0xff] %v623_v17  ;;  %671 = vst [vmem:[%s1411_s24 + $0xc0] sm:$0xff] %v639_v18  ;;  %v625_v29 = vmax.f32 %v561_v19, 0.0  ;;  %v641_v30 = vmax.f32 %v601_v20, 0.0 }
 0x185   : > { %656 = vst [vmem:[%s1411_s24 + $0x48] sm:$0xff] %v624_v25  ;;  %672 = vst [vmem:[%s1411_s24 + $0xc8] sm:$0xff] %v640_v26  ;;  %v626_v31 = vmax.f32 %v563_v27, 0.0  ;;  %v642_v32 = vmax.f32 %v603_v28, 0.0 }
 0x186   : > { %657 = vst [vmem:[%s1411_s24 + $0x50] sm:$0xff] %v625_v29  ;;  %673 = vst [vmem:[%s1411_s24 + $0xd0] sm:$0xff] %v641_v30 }
 0x187   : > { %658 = vst [vmem:[%s1411_s24 + $0x58] sm:$0xff] %v626_v31  ;;  %674 = vst [vmem:[%s1411_s24 + $0xd8] sm:$0xff] %v642_v32  ;;  %v566_v33 = vpop.f32.mrb[12].mxu0  ;;  %v606_v34 = vpop.f32.mrb[12].mxu1 }
 0x188   : > { %v567_v35 = vadd.f32 %v566_v33, %v1397_v21  ;;  %v607_v36 = vadd.f32 %v606_v34, %v1397_v21  ;;  %v568_v37 = vpop.f32.mrb[13].mxu0  ;;  %v608_v38 = vpop.f32.mrb[13].mxu1 }
 0x189   : > { %v569_v39 = vadd.f32 %v568_v37, %v1399_v22  ;;  %v609_v40 = vadd.f32 %v608_v38, %v1399_v22  ;;  %v570_v41 = vpop.f32.mrb[14].mxu0  ;;  %v610_v42 = vpop.f32.mrb[14].mxu1 }
 0x18a   : > { %v627_v43 = vmax.f32 %v567_v35, 0.0  ;;  %v643_v44 = vmax.f32 %v607_v36, 0.0  ;;  %v571_v45 = vadd.f32 %v570_v41, %v1397_v21  ;;  %v611_v46 = vadd.f32 %v610_v42, %v1397_v21  ;;  %v572_v47 = vpop.f32.mrb[15].mxu0  ;;  %v612_v48 = vpop.f32.mrb[15].mxu1 }
 0x18b   : > { %v628_v49 = vmax.f32 %v569_v39, 0.0  ;;  %v644_v50 = vmax.f32 %v609_v40, 0.0  ;;  %v573_v51 = vadd.f32 %v572_v47, %v1399_v22  ;;  %v613_v52 = vadd.f32 %v612_v48, %v1399_v22 }
 0x18c   : > { %659 = vst [vmem:[%s1411_s24 + $0x60] sm:$0xff] %v627_v43  ;;  %675 = vst [vmem:[%s1411_s24 + $0xe0] sm:$0xff] %v643_v44  ;;  %v629_v53 = vmax.f32 %v571_v45, 0.0  ;;  %v645_v54 = vmax.f32 %v611_v46, 0.0 }
 0x18d   : > { %660 = vst [vmem:[%s1411_s24 + $0x68] sm:$0xff] %v628_v49  ;;  %676 = vst [vmem:[%s1411_s24 + $0xe8] sm:$0xff] %v644_v50  ;;  %v630_v21 = vmax.f32 %v573_v51, 0.0  ;;  %v646_v55 = vmax.f32 %v613_v52, 0.0 }
 0x18e   : > { %661 = vst [vmem:[%s1411_s24 + $0x70] sm:$0xff] %v629_v53  ;;  %677 = vst [vmem:[%s1411_s24 + $0xf0] sm:$0xff] %v645_v54 }
 0x18f   : > { %662 = vst [vmem:[%s1411_s24 + $0x78] sm:$0xff] %v630_v21  ;;  %678 = vst [vmem:[%s1411_s24 + $0xf8] sm:$0xff] %v646_v55 }
 0x190   : > { %1090 = shalt.err (!%p1087_p5)
}
 0x191   : > { %s1091_s25 = scalar_lea.hbm %s1468_s18, 4096  ;;  %s1095_s6 = scalar_lea.hbm %s1528_s3, 8192 }
 0x192   : > { %p1092_p9 = scmp.ne.s32.totalorder %s1468_s18, %s1091_s25  ;;  %p1096_p3 = scmp.lt.u32.totalorder %s1468_s18, %s1528_s3 }
 0x193   : > { %p1097_p7 = scmp.lt.u32.totalorder %s1095_s6, %s1091_s25  ;;  %p1099_p4 = scmp.lt.u32.totalorder %s1091_s25, %s1468_s18 }
 0x194   : > { %p1093_p1 = pnand %p1092_p9, %p1290_p10 }
 0x195   : > { %p1098_p13 = por %p1097_p7, %p1096_p3 }
 0x196   : > { %p1094_p2 = pneg %p1093_p1 }
 0x197   : > { %p1100_p6 = por %p1099_p4, %p1098_p13 }
 0x199   : > { %p1101_p8 = pnand %p1100_p6, %p1094_p2 }
 0x19b   : > { %1104 = shalt.err (!%p1101_p8)
}
 0x19c   : > { %s1172_s24 = smov 256   ;;  %s1173_s9 = smov 16  }
 0x19d   : > { %898 = dma.vmem_to_hbm [thread:$0]  (%p1290_p10), %s1470_s10, 4096, %s1468_s18, %s680_s26, %s1172_s24, %s1172_s24, %s1173_s9  }
 0x19e PF: > { %s711_s15 = sand.u32 1, %s1143_s12   ;;  %p1546_p12 = scmp.ne.s32.totalorder %s1536_s23, 0 }
 0x19f   : > { %p1547_p11 = scmp.ge.s32.totalorder %s1163_s17, 2  ;;  %s712_s11 = scalar_lea.sflag [#allocation4], %s711_s15 }
 0x1a1   : > { %p909_p0 = pnand %p1547_p11, %p1546_p12 }
 0x1a3   : > { %1138 = dma.done.wait (!%p909_p0), %s712_s11, 4096  }
 0x1a4   : > { %1140 = vsyncadd (!%p909_p0), %s712_s11, 4294963200  ;;  %s20_s17 = sadd.s32 1, %s1163_s17   ;;  %s1548_s12 = smov %s1147_s13 }
 0x1a5   : > { %p17_p5 = scmp.ge.s32.totalorder %s20_s17, 4   ;;  %s1549_s13 = smov %s1151_s14 }
 0x1a6   : > { %s1550_s14 = smov %s1299_s5  ;;  %s1551_s15 = smov %s1159_s16 }
 0x1a7   : > { %s1552_s16 = smov %s1554_s28  ;;  %19 = sbr.rel (!%p17_p5) target bundleno = 7 (0x7), region = 85 }
 0x1ae   :  { %717 = vsyncpa [#allocation3], 1 }
 0x1af   :  { %719 = vsyncpa [#allocation3 + $0x1], 1 }
 0x1b0   :  { %720 = vsyncpa [#allocation6], 1 }
 0x1b1   :  { %721 = vsyncpa [#allocation4], 1 }
 0x1b2   :  { %723 = vsyncpa [#allocation4 + $0x1], 1 }

</bundles_post_ra>
